<compile_context>
chip_gen: v7x
topology: tpu7x:2x2x1
jax: 0.10.0
libtpu: 0.0.40
codegen_flags: <defaults>
</compile_context>

<pallas_src>
import math

import jax
import jax.numpy as jnp
from jax.experimental import pallas as pl
from jax.experimental.pallas import tpu as pltpu


# ----------------------------------------------------------------------------
# Kernel bodies
# ----------------------------------------------------------------------------
def _make_kernel(n_weight_streams, multi_k):
    """Kernel for 3 weight streams (training) or 1 (eval / pre-fused)."""

    def _fused_w(w_refs):
        if n_weight_streams == 3:
            # fused noisy weight on the VPU (each stream read from HBM once)
            return w_refs[0][...] + w_refs[1][...] * w_refs[2][...]
        return w_refs[0][...]

    if not multi_k:
        # Single K block: no accumulator scratch, no pl.when phases.
        def kernel(*refs):
            x12_ref = refs[0]                          # (B, K)
            w_refs = refs[1:1 + n_weight_streams]      # each (tO, K)
            b_ref = refs[1 + n_weight_streams]         # (1, tO)
            o_ref = refs[2 + n_weight_streams]         # (B, tO)
            acc = jax.lax.dot_general(
                x12_ref[...], _fused_w(w_refs),
                dimension_numbers=(((1,), (1,)), ((), ())),
                preferred_element_type=jnp.float32)
            o_ref[...] = (acc + b_ref[...]).astype(o_ref.dtype)
        return kernel

    def kernel(*refs):
        x12_ref = refs[0]                              # (B, tK)
        w_refs = refs[1:1 + n_weight_streams]          # each (tO, tK)
        b_ref = refs[1 + n_weight_streams]             # (1, tO)
        o_ref = refs[2 + n_weight_streams]             # (B, tO)
        acc_ref = refs[3 + n_weight_streams]           # (B, tO) f32 scratch

        k = pl.program_id(1)

        @pl.when(k == 0)
        def _():
            acc_ref[...] = jnp.zeros_like(acc_ref)

        acc_ref[...] += jax.lax.dot_general(
            x12_ref[...], _fused_w(w_refs),
            dimension_numbers=(((1,), (1,)), ((), ())),
            preferred_element_type=jnp.float32)

        @pl.when(k == pl.num_programs(1) - 1)
        def _():
            o_ref[...] = (acc_ref[...] + b_ref[...]).astype(o_ref.dtype)

    return kernel


# ----------------------------------------------------------------------------
# Device probing & tiling heuristics
# ----------------------------------------------------------------------------
def _device_kind():
    try:
        return jax.devices()[0].device_kind.lower()
    except Exception:
        return ""


def _vmem_capacity_bytes():
    try:
        info = pltpu.get_tpu_info()
        cap = getattr(info, "vmem_capacity_bytes", None)
        if cap:
            return int(cap)
    except Exception:
        pass
    # Fallback from device kind: v7x = 64 MiB / TC, v5e/v6e (and friends) = 128 MiB.
    kind = _device_kind()
    if "v7" in kind:
        return 64 * 1024 * 1024
    return 128 * 1024 * 1024


def _num_tensorcores():
    try:
        info = pltpu.get_tpu_info()
        for attr in ("num_cores", "num_tensorcores", "tensorcores_per_chip"):
            n = getattr(info, attr, None)
            if n:
                return int(n)
    except Exception:
        pass
    return 2 if "v7" in _device_kind() else 1


def _block_bytes(B, tO, tK, n_streams, w_itemsize, x_itemsize):
    # double-buffered weight streams + fused-weight VMEM temporary (training)
    # + double-buffered x12 + bias tiles + acc/out tiles
    wb = 2 * n_streams * tO * tK * w_itemsize
    fused = tO * tK * w_itemsize if n_streams == 3 else 0
    xb = 2 * B * tK * x_itemsize
    bb = 2 * tO * 4
    outb = 3 * B * tO * 4
    return wb + fused + xb + bb + outb


def _tile_budget(vmem_bytes):
    # Keep a bit more slack on 64 MiB-VMEM parts (v7x); 128 MiB parts can push.
    frac = 0.65 if vmem_bytes <= 64 * 1024 * 1024 else 0.75
    return max(int(frac * vmem_bytes), 2 * 1024 * 1024)


def _choose_tiles(B, O, K, n_streams, w_itemsize, x_itemsize, vmem_bytes, num_tc):
    budget = _tile_budget(vmem_bytes)
    tO, tK = O, K

    # Multi-TC parts (v7x): force >=2 blocks on the "parallel" O axis so the
    # grid can be sharded across TensorCores (a 1-step axis leaves a TC idle).
    if num_tc > 1 and O >= 256:
        target = O // num_tc
        target -= target % 128
        for cand in range(target, 127, -128):
            if O % cand == 0:
                tO = cand
                break

    if _block_bytes(B, tO, tK, n_streams, w_itemsize, x_itemsize) <= budget:
        return tO, tK

    # Shrink the O (parallel) axis first, 128-aligned so output stays lane-dense.
    for cand in (1024, 512, 256, 128):
        if cand < tO and O % cand == 0:
            tO = cand
            if _block_bytes(B, tO, tK, n_streams, w_itemsize, x_itemsize) <= budget:
                return tO, tK
    # Then shrink the K (reduction) axis, 128-aligned.
    for cand in (32768, 16384, 8192, 4096, 2048, 1024, 512, 256, 128):
        if cand < tK and K % cand == 0:
            tK = cand
            if _block_bytes(B, tO, tK, n_streams, w_itemsize, x_itemsize) <= budget:
                return tO, tK
    return tO, tK


def _vmem_limit(vmem_bytes, effective_block_bytes):
    headroom = 8 * 1024 * 1024
    if vmem_bytes <= 64 * 1024 * 1024:
        cap = 50 * 1024 * 1024          # v7x: Mosaic scratch/semaphores need room
    else:
        cap = int(0.85 * vmem_bytes)    # v5e / v6e: 128 MiB, plenty
    limit = min(max(32 * 1024 * 1024, effective_block_bytes + headroom), cap)
    # Never request less than the blocks themselves need.
    limit = max(limit, effective_block_bytes + 2 * 1024 * 1024)
    return int(limit)


def _weight_spec(tO, tK, buffers):
    idx = lambda o, k: (o, k)
    if buffers and buffers > 2:
        try:
            return pl.BlockSpec((tO, tK), idx, pipeline_mode=pl.Buffered(buffers))
        except Exception:
            pass  # older jax without pipeline_mode: fall back to default 2-deep
    return pl.BlockSpec((tO, tK), idx)


# ----------------------------------------------------------------------------
# Public helpers / wrapper
# ----------------------------------------------------------------------------
def fuse_noisy_weight(weight_mu, weight_sigma, weight_epsilon):
    """Pre-fuse W_eff = mu + sigma*eps once (plain JAX).

    Pass the result as `fused_weight=` to noisy_bilinear when the same noise
    sample is reused across many forward calls: the kernel then streams one
    weight tensor per call instead of three (~3x less HBM traffic on this
    bandwidth-bound op)."""
    return weight_mu + weight_sigma * weight_epsilon


def noisy_bilinear(x1, x2, weight_mu, weight_sigma=None, weight_epsilon=None,
                   bias_mu=None, bias_sigma=None, bias_epsilon=None,
                   *, training=True, fused_weight=None, compute_dtype=None,
                   block_o=None, block_k=None, weight_buffers=None):
    """Pallas implementation of NoisyBilinear.forward."""
    B, I1 = x1.shape
    B2, I2 = x2.shape
    assert B == B2, "batch mismatch between x1 and x2"
    O = weight_mu.shape[0]
    K = I1 * I2

    # Outer product of the two inputs, flattened to the contraction axis
    # (B*K elements, negligible next to the O*K weight streams).
    x12 = (x1[:, :, None] * x2[:, None, :]).reshape(B, K)

    # Flattened weight streams (metadata-only reshape, lane-dense last dim).
    if not training:
        weights = (weight_mu.reshape(O, K),)          # mu-only: never stream sigma/eps
    elif fused_weight is not None:
        weights = (fused_weight.reshape(O, K),)       # pre-fused: 1 stream per call
    else:
        weights = (weight_mu.reshape(O, K),
                   weight_sigma.reshape(O, K),
                   weight_epsilon.reshape(O, K))
    n_streams = len(weights)

    # Optional low-precision storage (f32 MXU accumulation is kept).
    if compute_dtype is not None:
        x12 = x12.astype(compute_dtype)
        weights = tuple(w.astype(compute_dtype) for w in weights)

    # Effective bias (O scalars) computed in the wrapper -> single (1, O) input.
    if bias_mu is None:
        bias = jnp.zeros((O,), jnp.float32)
    elif training:
        bias = bias_mu + bias_sigma * bias_epsilon
    else:
        bias = bias_mu
    bias = bias.reshape(1, O).astype(jnp.float32)

    w_itemsize = jnp.dtype(weights[0].dtype).itemsize
    x_itemsize = jnp.dtype(x12.dtype).itemsize
    vmem = _vmem_capacity_bytes()
    num_tc = _num_tensorcores()
    budget = _tile_budget(vmem)

    tO, tK = _choose_tiles(B, O, K, n_streams, w_itemsize, x_itemsize, vmem, num_tc)
    if block_o is not None:
        tO = block_o
    if block_k is not None:
        tK = block_k

    n_o, n_k = pl.cdiv(O, tO), pl.cdiv(K, tK)
    multi_k = n_k > 1

    block_bytes = _block_bytes(B, tO, tK, n_streams, w_itemsize, x_itemsize)

    # Auto triple-buffering of the weight streams on 128 MiB-VMEM parts when
    # there is headroom (compute/step is tiny, hides DMA-issue bubbles).
    triple_extra = n_streams * tO * tK * w_itemsize
    if weight_buffers is None:
        if (multi_k and vmem >= 96 * 1024 * 1024
                and block_bytes + triple_extra <= budget):
            weight_buffers = 3
        else:
            weight_buffers = 2
    effective_block = block_bytes + (triple_extra if weight_buffers > 2 else 0)
    vmem_limit = _vmem_limit(vmem, effective_block)

    w_spec = _weight_spec(tO, tK, weight_buffers)
    in_specs = ([pl.BlockSpec((B, tK), lambda o, k: (0, k))]
                + [w_spec] * n_streams
                + [pl.BlockSpec((1, tO), lambda o, k: (0, o))])
    out_specs = pl.BlockSpec((B, tO), lambda o, k: (0, o))
    scratch_shapes = [] if not multi_k else [pltpu.VMEM((B, tO), jnp.float32)]

    return pl.pallas_call(
        _make_kernel(n_streams, multi_k),
        out_shape=jax.ShapeDtypeStruct((B, O), x1.dtype),
        grid_spec=pltpu.PrefetchScalarGridSpec(
            num_scalar_prefetch=0,
            grid=(n_o, n_k),
            in_specs=in_specs,
            out_specs=out_specs,
            scratch_shapes=scratch_shapes),
        compiler_params=pltpu.CompilerParams(
            dimension_semantics=("parallel", "arbitrary"),
            vmem_limit_bytes=vmem_limit),
    )(x12, *weights, bias)


# ----------------------------------------------------------------------------
# Parameter init mirroring NoisyBilinear.reset_parameters + sample_noise
# ----------------------------------------------------------------------------
def init_params(key, in1, in2, out, factorized_noise=True, sigma_init=None):
    if sigma_init is None:
        sigma_init = 0.5 if factorized_noise else 0.017
    p = in1 * in2
    mu_range = math.sqrt(1.0 / p) if factorized_noise else math.sqrt(3.0 / p)
    w_sigma_init = sigma_init / math.sqrt(p) if factorized_noise else sigma_init
    b_sigma_init = sigma_init / math.sqrt(out) if factorized_noise else sigma_init

    k1, k2, k3, k4, k5, k6 = jax.random.split(key, 6)
    weight_mu = jax.random.uniform(k1, (out, in1, in2), jnp.float32,
                                   minval=-mu_range, maxval=mu_range)
    weight_sigma = jnp.full((out, in1, in2), w_sigma_init, jnp.float32)
    bias_mu = jax.random.uniform(k2, (out,), jnp.float32,
                                 minval=-mu_range, maxval=mu_range)
    bias_sigma = jnp.full((out,), b_sigma_init, jnp.float32)

    # sample_noise (factorized): outer product of per-axis gaussians, cube-rooted.
    # TODO(synk): torch .pow(1/3) yields NaN for negatives; jnp.cbrt is the
    # signed cube root, so epsilon is not bit-for-bit identical for negatives.
    n_out = jax.random.normal(k3, (out,))
    n_in1 = jax.random.normal(k4, (in1,))
    n_in2 = jax.random.normal(k5, (in2,))
    noise = n_out[:, None, None] * n_in1[None, :, None] * n_in2[None, None, :]
    weight_epsilon = jnp.cbrt(noise).astype(jnp.float32)
    bias_epsilon = jax.random.normal(k6, (out,), jnp.float32)

    return (weight_mu, weight_sigma, weight_epsilon,
            bias_mu, bias_sigma, bias_epsilon)


def _reference(x1, x2, wmu, wsig, weps, bmu, bsig, beps, training=True):
    w = wmu + wsig * weps if training else wmu
    b = bmu + bsig * beps if training else bmu
    out = jnp.einsum('bi,oij,bj->bo', x1, w, x2,
                     precision=jax.lax.Precision.HIGHEST)
    return out + b[None, :]


if __name__ == "__main__":
    key = jax.random.PRNGKey(0)

    # --- small case, training mode, single-K fast path (no accumulator) -----
    B, IN1, IN2, OUT = 8, 32, 64, 16
    kp, kx1, kx2, kbig = jax.random.split(key, 4)
    params = init_params(kp, IN1, IN2, OUT)
    x1 = jax.random.normal(kx1, (B, IN1), jnp.float32)
    x2 = jax.random.normal(kx2, (B, IN2), jnp.float32)

    out = jax.block_until_ready(noisy_bilinear(x1, x2, *params, training=True))
    ref = _reference(x1, x2, *params, training=True)
    assert out.shape == (B, OUT)
    assert jnp.allclose(out, ref, atol=1e-4, rtol=1e-4), "train-mode mismatch"

    # --- eval mode: mu-only kernel variant (sigma/epsilon never streamed) ---
    out_eval = jax.block_until_ready(
        noisy_bilinear(x1, x2, *params, training=False))
    ref_eval = _reference(x1, x2, *params, training=False)
    assert jnp.allclose(out_eval, ref_eval, atol=1e-4, rtol=1e-4), \
        "eval-mode mismatch"

    # --- pre-fused weight path (noise reused across calls -> 1 stream) ------
    w_eff = fuse_noisy_weight(params[0], params[1], params[2])
    out_pf = jax.block_until_ready(
        noisy_bilinear(x1, x2, *params, training=True, fused_weight=w_eff))
    assert jnp.allclose(out_pf, ref, atol=1e-4, rtol=1e-4), \
        "pre-fused-weight mismatch"

    # --- opt-in bf16 storage (f32 accumulation), loose tolerance ------------
    out_bf16 = jax.block_until_ready(
        noisy_bilinear(x1, x2, *params, training=True,
                       compute_dtype=jnp.bfloat16))
    assert out_bf16.shape == (B, OUT)
    assert jnp.all(jnp.isfinite(out_bf16))
    assert jnp.max(jnp.abs(out_bf16 - ref)) < 0.1 * (jnp.max(jnp.abs(ref)) + 1.0), \
        "bf16-path drift too large"

    # --- larger O with forced tiles to exercise the O/K grid + accumulator --
    OUT_BIG = 256
    kpb, kx1b, kx2b = jax.random.split(kbig, 3)
    params_big = init_params(kpb, IN1, IN2, OUT_BIG)
    x1b = jax.random.normal(kx1b, (B, IN1), jnp.float32)
    x2b = jax.random.normal(kx2b, (B, IN2), jnp.float32)
    out_big = jax.block_until_ready(
        noisy_bilinear(x1b, x2b, *params_big, training=True,
                       block_o=128, block_k=512))
    ref_big = _reference(x1b, x2b, *params_big, training=True)
    assert out_big.shape == (B, OUT_BIG)
    assert jnp.allclose(out_big, ref_big, atol=1e-4, rtol=1e-4), \
        "tiled-grid mismatch"

    print("KERNEL_OK")
</pallas_src>

<mosaic_0001>
module attributes {stable_mosaic.version = 11 : i64} {
  func.func @kernel(%arg0: i32, %arg1: i32, %arg2: memref<8x2048xf32, #tpu.memory_space<vmem>>, %arg3: memref<16x2048xf32, #tpu.memory_space<vmem>>, %arg4: memref<16x2048xf32, #tpu.memory_space<vmem>>, %arg5: memref<16x2048xf32, #tpu.memory_space<vmem>>, %arg6: memref<1x16xf32, #tpu.memory_space<vmem>>, %arg7: memref<8x16xf32, #tpu.memory_space<vmem>>) attributes {dimension_semantics = [#tpu.dimension_semantics<parallel>, #tpu.dimension_semantics<arbitrary>], iteration_bounds = array<i64: 1, 1>, scalar_prefetch = 0 : i64, scratch_operands = 0 : i64, tpu.core_type = #tpu.core_type<tc>, window_params = [{transform_indices = @transform_0, window_bounds = array<i64: 8, 2048>}, {transform_indices = @transform_1, window_bounds = array<i64: 16, 2048>}, {transform_indices = @transform_2, window_bounds = array<i64: 16, 2048>}, {transform_indices = @transform_3, window_bounds = array<i64: 16, 2048>}, {transform_indices = @transform_4, window_bounds = array<i64: 1, 16>}, {transform_indices = @transform_5, window_bounds = array<i64: 8, 16>}]} {
    %c0 = arith.constant 0 : index
    %c0_0 = arith.constant 0 : index
    %0 = vector.load %arg2[%c0, %c0_0] : memref<8x2048xf32, #tpu.memory_space<vmem>>, vector<8x2048xf32>
    %c0_1 = arith.constant 0 : index
    %c0_2 = arith.constant 0 : index
    %1 = vector.load %arg3[%c0_1, %c0_2] : memref<16x2048xf32, #tpu.memory_space<vmem>>, vector<16x2048xf32>
    %c0_3 = arith.constant 0 : index
    %c0_4 = arith.constant 0 : index
    %2 = vector.load %arg4[%c0_3, %c0_4] : memref<16x2048xf32, #tpu.memory_space<vmem>>, vector<16x2048xf32>
    %c0_5 = arith.constant 0 : index
    %c0_6 = arith.constant 0 : index
    %3 = vector.load %arg5[%c0_5, %c0_6] : memref<16x2048xf32, #tpu.memory_space<vmem>>, vector<16x2048xf32>
    %4 = arith.mulf %2, %3 : vector<16x2048xf32>
    %5 = arith.addf %1, %4 : vector<16x2048xf32>
    %cst = arith.constant dense<0.000000e+00> : vector<8x16xf32>
    %6 = tpu.matmul %0, %5, %cst {dimension_numbers = #tpu.dot_dimension_numbers<[1], [1], [0], [0], [0, 0, 1, 0], [], []>} : vector<8x2048xf32>, vector<16x2048xf32>, vector<8x16xf32> -> vector<8x16xf32>
    %c0_7 = arith.constant 0 : index
    %c0_8 = arith.constant 0 : index
    %7 = vector.load %arg6[%c0_7, %c0_8] : memref<1x16xf32, #tpu.memory_space<vmem>>, vector<1x16xf32>
    %8 = vector.broadcast %7 : vector<1x16xf32> to vector<8x16xf32>
    %9 = arith.addf %6, %8 : vector<8x16xf32>
    %c0_9 = arith.constant 0 : index
    %c0_10 = arith.constant 0 : index
    %10 = vector.load %arg7[%c0_9, %c0_10] : memref<8x16xf32, #tpu.memory_space<vmem>>, vector<8x16xf32>
    tpu.vector_store %arg7[%c0_9, %c0_10], %9 {strides = array<i32>} : memref<8x16xf32, #tpu.memory_space<vmem>>, vector<8x16xf32>,
    return
  }
  func.func @transform_0(%arg0: i32, %arg1: i32) -> (i32, i32) {
    %c0_i32 = arith.constant 0 : i32
    %c0_i32_0 = arith.constant 0 : i32
    return %c0_i32, %arg1 : i32, i32
  }
  func.func @transform_1(%arg0: i32, %arg1: i32) -> (i32, i32) {
    %c0_i32 = arith.constant 0 : i32
    return %arg0, %arg1 : i32, i32
  }
  func.func @transform_2(%arg0: i32, %arg1: i32) -> (i32, i32) {
    %c0_i32 = arith.constant 0 : i32
    return %arg0, %arg1 : i32, i32
  }
  func.func @transform_3(%arg0: i32, %arg1: i32) -> (i32, i32) {
    %c0_i32 = arith.constant 0 : i32
    return %arg0, %arg1 : i32, i32
  }
  func.func @transform_4(%arg0: i32, %arg1: i32) -> (i32, i32) {
    %c0_i32 = arith.constant 0 : i32
    %c0_i32_0 = arith.constant 0 : i32
    return %c0_i32, %arg0 : i32, i32
  }
  func.func @transform_5(%arg0: i32, %arg1: i32) -> (i32, i32) {
    %c0_i32 = arith.constant 0 : i32
    %c0_i32_0 = arith.constant 0 : i32
    return %c0_i32, %arg0 : i32, i32
  }
}

</mosaic_0001>

<bundles_post_ra>
// kernel: tpu_custom_call.1
= control target key start
LH: loop header
LB: loop body
LE: loop exit
PB: predicated region body
PF: predicated region fallthrough
CT: control target
= control target key end

     0   :  { %10 = vsyncpa [#allocation3], 0  ;;  %s1117_s0 = inlined_call_operand.hbm [shape: f32[8,2048], index: 0, kind: input, shape index: {}]   ;;  %s1118_s1 = inlined_call_operand.hbm [shape: f32[16,2048], index: 1, kind: input, shape index: {}]   ;;  %s1119_s2 = inlined_call_operand.hbm [shape: f32[16,2048], index: 2, kind: input, shape index: {}]   ;;  %s1120_s3 = inlined_call_operand.hbm [shape: f32[16,2048], index: 3, kind: input, shape index: {}]   ;;  %s1121_s4 = inlined_call_operand.vmem [shape: f32[1,16], index: 4, kind: input, shape index: {}]   ;;  %s1122_s5 = inlined_call_operand.hbm [shape: f32[8,16], index: 5, kind: output, shape index: {}]  }
   0x1   :  { %11 = vsyncpa [#allocation6], 0 }
   0x2   :  { %12 = vsyncpa [#allocation9], 0 }
   0x3   :  { %13 = vsyncpa [#allocation4], 0  ;;  %s1008_s18 = smov [#allocation5]   ;;  %s890_s22 = scalar_lea.hbm %s1118_s1, 4096 }
   0x4   :  { %s29_s19 = sshll.u32 %s1008_s18, 4  ;;  %p891_p0 = scmp.ne.s32.totalorder %s1118_s1, %s890_s22  ;;  %s30_s19 = int_to_ptr.vmem [resolvable:$true] %s29_s19 }
   0x5   :  { %p894_p1 = scmp.lt.u32.totalorder %s890_s22, %s1118_s1 }
   0x7   :  { %p896_p2 = pnand %p894_p1, %p891_p0 }
   0x9   :  { %899 = shalt.err (!%p896_p2)
}
   0xa   :  { %s900_s27 = scalar_lea.vmem %s30_s19, 4096  ;;  %p905_p4 = scmp.lt.s32.totalorder %s30_s19, %s30_s19 }
   0xb   :  { %p901_p3 = scmp.ne.s32.totalorder %s30_s19, %s900_s27  ;;  %p906_p5 = scmp.lt.s32.totalorder %s900_s27, %s900_s27 }
   0xd   :  { %p907_p6 = por %p906_p5, %p905_p4 }
   0xf   :  { %p908_p7 = pnand %p907_p6, %p901_p3 }
  0x11   :  { %911 = shalt.err (!%p908_p7)
}
  0x12   :  { %s1009_s28 = smov 2048   ;;  %s1010_s29 = smov 128  }
  0x13   :  { %35 = dma.hbm_to_vmem [thread:$0]  %s1118_s1, 4096, %s30_s19, [#allocation6], %s1009_s28, %s1009_s28, %s1010_s29  }
  0x14   :  { %s1011_s7 = smov [#allocation2]   ;;  %s1012_s9 = smov [#allocation7]  }
  0x15   :  { %s20_s8 = sshll.u32 %s1011_s7, 4  ;;  %s41_s10 = sshll.u32 %s1012_s9, 4  ;;  %s21_s8 = int_to_ptr.vmem [resolvable:$true] %s20_s8  ;;  %s42_s10 = int_to_ptr.vmem [resolvable:$true] %s41_s10 }
  0x16   :  { %s912_s13 = scalar_lea.hbm %s1117_s0, 2048 }
  0x17   :  { %p913_p8 = scmp.ne.s32.totalorder %s1117_s0, %s912_s13  ;;  %p916_p9 = scmp.lt.u32.totalorder %s912_s13, %s1117_s0 }
  0x19   :  { %p918_p10 = pnand %p916_p9, %p913_p8 }
  0x1b   :  { %921 = shalt.err (!%p918_p10)
}
  0x1c   :  { %s922_s1 = scalar_lea.vmem %s21_s8, 2048  ;;  %p927_p12 = scmp.lt.s32.totalorder %s21_s8, %s21_s8 }
  0x1d   :  { %p923_p11 = scmp.ne.s32.totalorder %s21_s8, %s922_s1  ;;  %p928_p13 = scmp.lt.s32.totalorder %s922_s1, %s922_s1 }
  0x1f   :  { %p929_p0 = por %p928_p13, %p927_p12 }
  0x21   :  { %p930_p1 = pnand %p929_p0, %p923_p11 }
  0x23   :  { %933 = shalt.err (!%p930_p1)
}
  0x24   :  { %23 = dma.hbm_to_vmem [thread:$0]  %s1117_s0, 2048, %s21_s8, [#allocation3]  }
  0x25   :  { %s934_s22 = scalar_lea.hbm %s1119_s2, 4096 }
  0x26   :  { %p935_p2 = scmp.ne.s32.totalorder %s1119_s2, %s934_s22  ;;  %p938_p3 = scmp.lt.u32.totalorder %s934_s22, %s1119_s2 }
  0x28   :  { %p940_p4 = pnand %p938_p3, %p935_p2 }
  0x2a   :  { %943 = shalt.err (!%p940_p4)
}
  0x2b   :  { %s944_s27 = scalar_lea.vmem %s42_s10, 4096  ;;  %p949_p6 = scmp.lt.s32.totalorder %s42_s10, %s42_s10 }
  0x2c   :  { %p945_p5 = scmp.ne.s32.totalorder %s42_s10, %s944_s27  ;;  %p950_p7 = scmp.lt.s32.totalorder %s944_s27, %s944_s27 }
  0x2e   :  { %p951_p8 = por %p950_p7, %p949_p6 }
  0x30   :  { %p952_p9 = pnand %p951_p8, %p945_p5 }
  0x32   :  { %955 = shalt.err (!%p952_p9)
}
  0x33   :  { %47 = dma.hbm_to_vmem [thread:$0]  %s1119_s2, 4096, %s42_s10, [#allocation6], %s1009_s28, %s1009_s28, %s1010_s29  }
  0x34   :  { %s1013_s6 = smov [#allocation8]   ;;  %s956_s11 = scalar_lea.hbm %s1120_s3, 4096 }
  0x35   :  { %s53_s7 = sshll.u32 %s1013_s6, 4  ;;  %p957_p10 = scmp.ne.s32.totalorder %s1120_s3, %s956_s11  ;;  %s54_s7 = int_to_ptr.vmem [resolvable:$true] %s53_s7 }
  0x36   :  { %p960_p11 = scmp.lt.u32.totalorder %s956_s11, %s1120_s3 }
  0x38   :  { %p962_p12 = pnand %p960_p11, %p957_p10 }
  0x3a   :  { %965 = shalt.err (!%p962_p12)
}
  0x3b   :  { %s966_s16 = scalar_lea.vmem %s54_s7, 4096  ;;  %p971_p0 = scmp.lt.s32.totalorder %s54_s7, %s54_s7 }
  0x3c   :  { %p967_p13 = scmp.ne.s32.totalorder %s54_s7, %s966_s16  ;;  %p972_p1 = scmp.lt.s32.totalorder %s966_s16, %s966_s16 }
  0x3e   :  { %p973_p2 = por %p972_p1, %p971_p0 }
  0x40   :  { %p974_p3 = pnand %p973_p2, %p967_p13 }
  0x42   :  { %977 = shalt.err (!%p974_p3)
}
  0x43   :  { %59 = dma.hbm_to_vmem [thread:$0]  %s1120_s3, 4096, %s54_s7, [#allocation9], %s1009_s28, %s1009_s28, %s1010_s29  }
  0x44   :  { %1000 = dma.done.wait [#allocation3], 2048  }
  0x45   :  { %1001 = vsyncadd [#allocation3], 4294965248 }
  0x46   :  { %1002 = dma.done.wait [#allocation6], 8192  }
  0x47   :  { %1003 = vsyncadd [#allocation6], 4294959104 }
  0x48   :  { %1004 = dma.done.wait [#allocation9], 4096  }
  0x49   :  { %1005 = vsyncadd [#allocation9], 4294963200  ;;  %v91_v0 = vld [vmem:[#allocation5 + $0x8] sm:$0xff]  ;;  %v90_v18 = vld [vmem:[#allocation5] sm:$0xff]  ;;  %s1014_s29 = smov [#allocation10]   ;;  %vm817_vm0 = vcmask 130048  }
  0x4a   :  { %v107_v1 = vld [vmem:[#allocation5 + $0x88] sm:$0xff]  ;;  %v106_v19 = vld [vmem:[#allocation5 + $0x80] sm:$0xff]  ;;  %v93_v42 = vld [vmem:[#allocation5 + $0x18] sm:$0xff]  ;;  %s825_s17 = sshll.u32 %s1014_s29, 4  ;;  %s826_s17 = int_to_ptr.vmem [resolvable:$true] %s825_s17 }
  0x4b   :  { %v123_v2 = vld [vmem:[#allocation7 + $0x8] sm:$0xff]  ;;  %v122_v20 = vld [vmem:[#allocation7] sm:$0xff]  ;;  %v109_v43 = vld [vmem:[#allocation5 + $0x98] sm:$0xff]  ;;  %s978_s1 = scalar_lea.vmem %s826_s17, 128  ;;  %p983_p5 = scmp.lt.s32.totalorder %s826_s17, %s826_s17 }
  0x4c   :  { %v139_v3 = vld [vmem:[#allocation7 + $0x88] sm:$0xff]  ;;  %v138_v21 = vld [vmem:[#allocation7 + $0x80] sm:$0xff]  ;;  %v125_v44 = vld [vmem:[#allocation7 + $0x18] sm:$0xff]  ;;  %p979_p4 = scmp.ne.s32.totalorder %s826_s17, %s978_s1  ;;  %p984_p6 = scmp.lt.s32.totalorder %s978_s1, %s978_s1 }
  0x4d   :  { %v155_v4 = vld [vmem:[#allocation8 + $0x8] sm:$0xff]  ;;  %v154_v22 = vld [vmem:[#allocation8] sm:$0xff]  ;;  %v141_v47 = vld [vmem:[#allocation7 + $0x98] sm:$0xff] }
  0x4e   :  { %v171_v5 = vld [vmem:[#allocation8 + $0x88] sm:$0xff]  ;;  %v187_v6 = vmul.f32 %v155_v4, %v123_v2  ;;  %v170_v23 = vld [vmem:[#allocation8 + $0x80] sm:$0xff]  ;;  %v186_v27 = vmul.f32 %v154_v22, %v122_v20  ;;  %v157_v48 = vld [vmem:[#allocation8 + $0x18] sm:$0xff]  ;;  %p985_p7 = por %p984_p6, %p983_p5 }
  0x4f   :  { %v203_v7 = vmul.f32 %v171_v5, %v139_v3  ;;  %v99_v8 = vld [vmem:[#allocation5 + $0x48] sm:$0xff]  ;;  %v98_v28 = vld [vmem:[#allocation5 + $0x40] sm:$0xff]  ;;  %v202_v31 = vmul.f32 %v170_v23, %v138_v21  ;;  %v173_v49 = vld [vmem:[#allocation8 + $0x98] sm:$0xff]  ;;  %v189_v51 = vmul.f32 %v157_v48, %v125_v44 }
  0x50   :  { %v115_v9 = vld [vmem:[#allocation5 + $0xc8] sm:$0xff]  ;;  %v219_v14 = vadd.f32 %v187_v6, %v91_v0  ;;  %v114_v29 = vld [vmem:[#allocation5 + $0xc0] sm:$0xff]  ;;  %v218_v36 = vadd.f32 %v186_v27, %v90_v18  ;;  %v205_v52 = vmul.f32 %v173_v49, %v141_v47  ;;  %v101_v53 = vld [vmem:[#allocation5 + $0x58] sm:$0xff]  ;;  %p986_p8 = pnand %p985_p7, %p979_p4 }
  0x51   :  { %v131_v10 = vld [vmem:[#allocation7 + $0x48] sm:$0xff]  ;;  %v235_v15 = vadd.f32 %v203_v7, %v107_v1  ;;  %v130_v30 = vld [vmem:[#allocation7 + $0x40] sm:$0xff]  ;;  %v234_v41 = vadd.f32 %v202_v31, %v106_v19  ;;  %v133_v55 = vld [vmem:[#allocation7 + $0x58] sm:$0xff]  ;;  %v221_v58 = vadd.f32 %v189_v51, %v93_v42 }
  0x52   :  { %v147_v11 = vld [vmem:[#allocation7 + $0xc8] sm:$0xff]  ;;  %v146_v32 = vld [vmem:[#allocation7 + $0xc0] sm:$0xff]  ;;  %v149_v56 = vld [vmem:[#allocation7 + $0xd8] sm:$0xff]  ;;  %v237_v59 = vadd.f32 %v205_v52, %v109_v43 }
  0x53   :  { %v163_v12 = vld [vmem:[#allocation8 + $0x48] sm:$0xff]  ;;  %v837_v24 = vpack.c.bf16 %v235_v15, %v219_v14  ;;  %v162_v33 = vld [vmem:[#allocation8 + $0x40] sm:$0xff]  ;;  %v839_v50 = vpack.c.bf16 %v234_v41, %v218_v36  ;;  %v165_v57 = vld [vmem:[#allocation8 + $0x58] sm:$0xff] }
  0x54   :  { %v179_v13 = vld [vmem:[#allocation8 + $0xc8] sm:$0xff]  ;;  %v195_v16 = vmul.f32 %v163_v12, %v131_v10  ;;  %v178_v34 = vld [vmem:[#allocation8 + $0xc0] sm:$0xff]  ;;  %v194_v37 = vmul.f32 %v162_v33, %v130_v30  ;;  %v117_v60 = vld [vmem:[#allocation5 + $0xd8] sm:$0xff]  ;;  %v197_v62 = vmul.f32 %v165_v57, %v133_v55  ;;  %v841_v5 = vpack.c.bf16 %v237_v59, %v221_v58 }
  0x55   :  { %v211_v17 = vmul.f32 %v179_v13, %v147_v11  ;;  %838 = vmatprep.subr.bf16.mxu1 %v837_v24  ;;  %v210_v38 = vmul.f32 %v178_v34, %v146_v32  ;;  %v75_v39 = vld [vmem:[#allocation2 + $0x8] sm:$0xff]  ;;  %v181_v61 = vld [vmem:[#allocation8 + $0xd8] sm:$0xff]  ;;  %v92_v63 = vld [vmem:[#allocation5 + $0x10] sm:$0xff] }
  0x56   :  { %v227_v25 = vadd.f32 %v195_v16, %v99_v8  ;;  %v83_v40 = vld [vmem:[#allocation2 + $0x48] sm:$0xff]  ;;  %321 = vmatprep.mubr.f32.mxu1 %v75_v39  ;;  %v226_v45 = vadd.f32 %v194_v37, %v98_v28  ;;  %840 = vmatpush1.bf16.xpose.msra.mxu1 %v839_v50  ;;  %v213_v0 = vmul.f32 %v181_v61, %v149_v56  ;;  %v124_v1 = vld [vmem:[#allocation7 + $0x10] sm:$0xff]  ;;  %v74_v4 = vld [vmem:[#allocation2] sm:$0xff] }
  0x57   :  { %v243_v26 = vadd.f32 %v211_v17, %v115_v9  ;;  %601 = vmatprep.mubr.f32.mxu0 %v83_v40  ;;  %v242_v46 = vadd.f32 %v210_v38, %v114_v29  ;;  %v140_v2 = vld [vmem:[#allocation7 + $0x90] sm:$0xff]  ;;  %v229_v6 = vadd.f32 %v197_v62, %v101_v53  ;;  %842 = vmatprep.subr.bf16.mxu1 %v841_v5  ;;  %v82_v16 = vld [vmem:[#allocation2 + $0x40] sm:$0xff]  ;;  %v77_v24 = vld [vmem:[#allocation2 + $0x18] sm:$0xff] }
  0x58   :  { %v156_v3 = vld [vmem:[#allocation8 + $0x10] sm:$0xff]  ;;  %v245_v11 = vadd.f32 %v213_v0, %v117_v60  ;;  %v127_v28 = vld [vmem:[#allocation7 + $0x28] sm:$0xff]  ;;  %v94_v48 = vld [vmem:[#allocation5 + $0x20] sm:$0xff] }
  0x59   :  { %v853_v35 = vpack.c.bf16 %v243_v26, %v227_v25  ;;  %v855_v54 = vpack.c.bf16 %v242_v46, %v226_v45  ;;  %v108_v7 = vld [vmem:[#allocation5 + $0x90] sm:$0xff]  ;;  %v188_v9 = vmul.f32 %v156_v3, %v124_v1  ;;  %v85_v25 = vld [vmem:[#allocation2 + $0x58] sm:$0xff]  ;;  %v95_v26 = vld [vmem:[#allocation5 + $0x28] sm:$0xff] }
  0x5a   :  { %v172_v8 = vld [vmem:[#allocation8 + $0x90] sm:$0xff]  ;;  %v857_v21 = vpack.c.bf16 %v245_v11, %v229_v6  ;;  %v143_v29 = vld [vmem:[#allocation7 + $0xa8] sm:$0xff]  ;;  %v126_v49 = vld [vmem:[#allocation7 + $0x20] sm:$0xff] }
  0x5b   :  { %854 = vmatprep.subr.bf16.mxu0 %v853_v35  ;;  %v100_v10 = vld [vmem:[#allocation5 + $0x50] sm:$0xff]  ;;  %v204_v12 = vmul.f32 %v172_v8, %v140_v2  ;;  %v220_v17 = vadd.f32 %v188_v9, %v92_v63  ;;  %v159_v30 = vld [vmem:[#allocation8 + $0x28] sm:$0xff]  ;;  %v142_v50 = vld [vmem:[#allocation7 + $0xa0] sm:$0xff] }
  0x5c   :  { %856 = vmatpush1.bf16.xpose.msra.mxu0 %v855_v54  ;;  %v132_v13 = vld [vmem:[#allocation7 + $0x50] sm:$0xff]  ;;  %v111_v33 = vld [vmem:[#allocation5 + $0xa8] sm:$0xff]  ;;  %v191_v35 = vmul.f32 %v159_v30, %v127_v28  ;;  %v110_v52 = vld [vmem:[#allocation5 + $0xa0] sm:$0xff] }
  0x5d   :  { %v148_v14 = vld [vmem:[#allocation7 + $0xd0] sm:$0xff]  ;;  %v236_v22 = vadd.f32 %v204_v12, %v108_v7  ;;  %322 = vmatmul.mubr.f32.vlgmr.msra.gmra.mrb[0].mxu1 %v74_v4  ;;  %858 = vmatprep.subr.bf16.mxu0 %v857_v21  ;;  %v175_v34 = vld [vmem:[#allocation8 + $0xa8] sm:$0xff]  ;;  %v158_v53 = vld [vmem:[#allocation8 + $0x20] sm:$0xff] }
  0x5e   :  { %v164_v15 = vld [vmem:[#allocation8 + $0x50] sm:$0xff]  ;;  %391 = vmatprep.mubr.f32.mxu1 %v77_v24  ;;  %v207_v36 = vmul.f32 %v175_v34, %v143_v29  ;;  %v103_v37 = vld [vmem:[#allocation5 + $0x68] sm:$0xff]  ;;  %v223_v41 = vadd.f32 %v191_v35, %v95_v26  ;;  %v174_v54 = vld [vmem:[#allocation8 + $0xa0] sm:$0xff]  ;;  %v190_v58 = vmul.f32 %v158_v53, %v126_v49 }
  0x5f   :  { %v116_v18 = vld [vmem:[#allocation5 + $0xd0] sm:$0xff]  ;;  %v196_v20 = vmul.f32 %v164_v15, %v132_v13  ;;  %v843_v31 = vpack.c.bf16 %v236_v22, %v220_v17  ;;  %v135_v38 = vld [vmem:[#allocation7 + $0x68] sm:$0xff]  ;;  %v102_v59 = vld [vmem:[#allocation5 + $0x60] sm:$0xff]  ;;  %v206_v62 = vmul.f32 %v174_v54, %v142_v50 }
  0x60   :  { %v180_v19 = vld [vmem:[#allocation8 + $0xd0] sm:$0xff]  ;;  %v151_v39 = vld [vmem:[#allocation7 + $0xe8] sm:$0xff]  ;;  %v239_v45 = vadd.f32 %v207_v36, %v111_v33  ;;  %v134_v60 = vld [vmem:[#allocation7 + $0x60] sm:$0xff]  ;;  %v222_v4 = vadd.f32 %v190_v58, %v94_v48 }
  0x61   :  { %v212_v23 = vmul.f32 %v180_v19, %v148_v14  ;;  %v228_v27 = vadd.f32 %v196_v20, %v100_v10  ;;  %844 = vmatpush1.bf16.xpose.msra.mxu1 %v843_v31  ;;  %v119_v42 = vld [vmem:[#allocation5 + $0xe8] sm:$0xff]  ;;  %v76_v51 = vld [vmem:[#allocation2 + $0x10] sm:$0xff]  ;;  %v150_v61 = vld [vmem:[#allocation7 + $0xe0] sm:$0xff]  ;;  %v238_v9 = vadd.f32 %v206_v62, %v110_v52 }
  0x62   :  { %v167_v43 = vld [vmem:[#allocation8 + $0x68] sm:$0xff]  ;;  %v845_v55 = vpack.c.bf16 %v239_v45, %v223_v41  ;;  %v118_v63 = vld [vmem:[#allocation5 + $0xe0] sm:$0xff]  ;;  %v84_v2 = vld [vmem:[#allocation2 + $0x50] sm:$0xff] }
  0x63   :  { %v244_v32 = vadd.f32 %v212_v23, %v116_v18  ;;  %602 = vmatmul.mubr.f32.vlgmr.msra.gmra.mrb[0].mxu0 %v82_v16  ;;  %v183_v44 = vld [vmem:[#allocation8 + $0xe8] sm:$0xff]  ;;  %v199_v46 = vmul.f32 %v167_v43, %v135_v38  ;;  %v166_v0 = vld [vmem:[#allocation8 + $0x60] sm:$0xff]  ;;  %v97_v10 = vld [vmem:[#allocation5 + $0x38] sm:$0xff]  ;;  %v847_v18 = vpack.c.bf16 %v238_v9, %v222_v4 }
  0x64   :  { %671 = vmatprep.mubr.f32.mxu0 %v85_v25  ;;  %v215_v47 = vmul.f32 %v183_v44, %v151_v39  ;;  %v182_v1 = vld [vmem:[#allocation8 + $0xe0] sm:$0xff]  ;;  %846 = vmatprep.subr.bf16.mxu1 %v845_v55  ;;  %v198_v5 = vmul.f32 %v166_v0, %v134_v60  ;;  %v79_v7 = vld [vmem:[#allocation2 + $0x28] sm:$0xff]  ;;  %v129_v11 = vld [vmem:[#allocation7 + $0x38] sm:$0xff] }
  0x65   :  { %v859_v40 = vpack.c.bf16 %v244_v32, %v228_v27  ;;  %v231_v56 = vadd.f32 %v199_v46, %v103_v37  ;;  %v214_v6 = vmul.f32 %v182_v1, %v150_v61  ;;  %v87_v8 = vld [vmem:[#allocation2 + $0x68] sm:$0xff]  ;;  %v145_v12 = vld [vmem:[#allocation7 + $0xb8] sm:$0xff]  ;;  %v96_v31 = vld [vmem:[#allocation5 + $0x30] sm:$0xff] }
  0x66   :  { %v247_v57 = vadd.f32 %v215_v47, %v119_v42  ;;  %v230_v13 = vadd.f32 %v198_v5, %v102_v59  ;;  %v113_v15 = vld [vmem:[#allocation5 + $0xb8] sm:$0xff]  ;;  %v112_v32 = vld [vmem:[#allocation5 + $0xb0] sm:$0xff]  ;;  %v78_v49 = vld [vmem:[#allocation2 + $0x20] sm:$0xff] }
  0x67   :  { %860 = vmatpush1.bf16.xpose.msra.mxu0 %v859_v40  ;;  %v246_v14 = vadd.f32 %v214_v6, %v118_v63  ;;  %v161_v16 = vld [vmem:[#allocation8 + $0x38] sm:$0xff]  ;;  %v128_v33 = vld [vmem:[#allocation7 + $0x30] sm:$0xff]  ;;  %v86_v54 = vld [vmem:[#allocation2 + $0x60] sm:$0xff] }
  0x68   :  { %v861_v3 = vpack.c.bf16 %v247_v57, %v231_v56  ;;  %392 = vmatmul.mubr.f32.vlgmr.msra.gmra.mrb[0].mxu1 %v76_v51  ;;  %v177_v17 = vld [vmem:[#allocation8 + $0xb8] sm:$0xff]  ;;  %v193_v19 = vmul.f32 %v161_v16, %v129_v11  ;;  %v144_v35 = vld [vmem:[#allocation7 + $0xb0] sm:$0xff]  ;;  %v836_v0 = vld [vmem:[%s1121_s4] ss:$0 sm:$0xff] }
  0x69   :  { %461 = vmatprep.mubr.f32.mxu1 %v79_v7  ;;  %v209_v20 = vmul.f32 %v177_v17, %v145_v12  ;;  %v105_v21 = vld [vmem:[#allocation5 + $0x78] sm:$0xff]  ;;  %v863_v24 = vpack.c.bf16 %v246_v14, %v230_v13  ;;  %848 = vmatpush1.bf16.xpose.msra.mxu1 %v847_v18  ;;  %v160_v36 = vld [vmem:[#allocation8 + $0x30] sm:$0xff] }
  0x6a   :  { %862 = vmatprep.subr.bf16.mxu0 %v861_v3  ;;  %v121_v22 = vld [vmem:[#allocation5 + $0xf8] sm:$0xff]  ;;  %v225_v28 = vadd.f32 %v193_v19, %v97_v10  ;;  %v176_v37 = vld [vmem:[#allocation8 + $0xb0] sm:$0xff]  ;;  %v192_v40 = vmul.f32 %v160_v36, %v128_v33 }
  0x6b   :  { %v137_v23 = vld [vmem:[#allocation7 + $0x78] sm:$0xff]  ;;  %v241_v29 = vadd.f32 %v209_v20, %v113_v15  ;;  %v208_v41 = vmul.f32 %v176_v37, %v144_v35  ;;  %v104_v42 = vld [vmem:[#allocation5 + $0x70] sm:$0xff] }
  0x6c   :  { %v153_v25 = vld [vmem:[#allocation7 + $0xf8] sm:$0xff]  ;;  %v120_v43 = vld [vmem:[#allocation5 + $0xf0] sm:$0xff]  ;;  %v224_v50 = vadd.f32 %v192_v40, %v96_v31 }
  0x6d   :  { %v169_v26 = vld [vmem:[#allocation8 + $0x78] sm:$0xff]  ;;  %v849_v38 = vpack.c.bf16 %v241_v29, %v225_v28  ;;  %v136_v44 = vld [vmem:[#allocation7 + $0x70] sm:$0xff]  ;;  %v240_v51 = vadd.f32 %v208_v41, %v112_v32 }
  0x6e   :  { %672 = vmatmul.mubr.f32.vlgmr.msra.gmra.mrb[0].mxu0 %v84_v2  ;;  %v185_v27 = vld [vmem:[#allocation8 + $0xf8] sm:$0xff]  ;;  %v201_v30 = vmul.f32 %v169_v26, %v137_v23  ;;  %v152_v46 = vld [vmem:[#allocation7 + $0xf0] sm:$0xff] }
  0x6f   :  { %741 = vmatprep.mubr.f32.mxu0 %v87_v8  ;;  %864 = vmatpush1.bf16.xpose.msra.mxu0 %v863_v24  ;;  %v217_v34 = vmul.f32 %v185_v27, %v153_v25  ;;  %v168_v47 = vld [vmem:[#allocation8 + $0x70] sm:$0xff]  ;;  %v851_v56 = vpack.c.bf16 %v240_v51, %v224_v50  ;;  %v81_v59 = vld [vmem:[#allocation2 + $0x38] sm:$0xff] }
  0x70   :  { %v233_v39 = vadd.f32 %v201_v30, %v105_v21  ;;  %v184_v48 = vld [vmem:[#allocation8 + $0xf0] sm:$0xff]  ;;  %850 = vmatprep.subr.bf16.mxu1 %v849_v38  ;;  %v200_v52 = vmul.f32 %v168_v47, %v136_v44  ;;  %v89_v60 = vld [vmem:[#allocation2 + $0x78] sm:$0xff]  ;;  %462 = vmatmul.mubr.f32.vlgmr.msra.gmra.mrb[0].mxu1 %v78_v49 }
  0x71   :  { %v249_v45 = vadd.f32 %v217_v34, %v121_v22  ;;  %v216_v53 = vmul.f32 %v184_v48, %v152_v46  ;;  %852 = vmatpush1.bf16.xpose.msra.mxu1 %v851_v56  ;;  %531 = vmatprep.mubr.f32.mxu1 %v81_v59  ;;  %v80_v62 = vld [vmem:[#allocation2 + $0x30] sm:$0xff] }
  0x72   :  { %v232_v57 = vadd.f32 %v200_v52, %v104_v42  ;;  %v88_v63 = vld [vmem:[#allocation2 + $0x70] sm:$0xff] }
  0x73   :  { %v865_v55 = vpack.c.bf16 %v249_v45, %v233_v39  ;;  %v248_v58 = vadd.f32 %v216_v53, %v120_v43 }
  0x75   :  { %866 = vmatprep.subr.bf16.mxu0 %v865_v55  ;;  %v867_v61 = vpack.c.bf16 %v248_v58, %v232_v57 }
  0x76   :  { %742 = vmatmul.mubr.f32.vlgmr.msra.gmra.mrb[0].mxu0 %v86_v54 }
  0x77   :  { %811 = vmatprep.mubr.f32.mxu0 %v89_v60  ;;  %868 = vmatpush1.bf16.xpose.msra.mxu0 %v867_v61 }
  0x78   :  { %532 = vmatmul.mubr.f32.vlgmr.msra.gmra.mrb[0].mxu1 %v80_v62 }
  0x7e   :  { %812 = vmatmul.mubr.f32.vlgmr.msra.gmra.mrb[0].mxu0 %v88_v63 }
 0x14b   :  { %v533_v1 = vpop.f32.mrb[0].mxu1 }
 0x14c   :  { %v869_v2 = vadd.f32 %v836_v0, %v533_v1  ;;  %v535_v3 = vpop.f32.mrb[1].mxu1 }
 0x151   :  { %v813_v4 = vpop.f32.mrb[0].mxu0 }
 0x152   :  { %v870_v5 = vadd.f32 %v869_v2, %v813_v4  ;;  %v815_v6 = vpop.f32.mrb[1].mxu0 }
 0x154   :  { %818 = vst.msk [vmem:[#allocation10] sm:$0xff] %vm817_vm0, %v870_v5 }
 0x155   :  { %989 = shalt.err (!%p986_p8)
}
 0x156   :  { %s990_s19 = scalar_lea.hbm %s1122_s5, 128 }
 0x157   :  { %p991_p9 = scmp.ne.s32.totalorder %s1122_s5, %s990_s19  ;;  %p994_p10 = scmp.lt.u32.totalorder %s990_s19, %s1122_s5 }
 0x159   :  { %p996_p11 = pnand %p994_p10, %p991_p9 }
 0x15b   :  { %999 = shalt.err (!%p996_p11)
}
 0x15c   :  { %828 = dma.vmem_to_hbm [thread:$0]  %s826_s17, 128, %s1122_s5, [#allocation4]  }
 0x15d   :  { %1006 = dma.done.wait [#allocation4], 128  }
 0x15e   :  { %1007 = vsyncadd [#allocation4], 4294967168 }
 0x15f   :  { %832 = vsyncpa [#allocation3], 1 }
 0x160   :  { %833 = vsyncpa [#allocation6], 1 }
 0x161   :  { %834 = vsyncpa [#allocation9], 1 }
 0x162   :  { %835 = vsyncpa [#allocation4], 1 }

</bundles_post_ra>
